<compile_context>
chip_gen: v5e
topology: v5e:2x2
jax: 0.10.0
libtpu: 0.0.40
codegen_flags: <defaults>
</compile_context>

<pallas_src>
import functools

import jax
import jax.numpy as jnp
from jax import lax
from jax.experimental import pallas as pl
from jax.experimental.pallas import tpu as pltpu


# ----------------------------------------------------------------------------
# Kernel: per-image, per-class masked feature means + presence flags, with the
# spatial (HW) axis tiled for DMA/compute overlap.
# ----------------------------------------------------------------------------
def _class_sum_kernel(feat_ref, lbl_ref, emb_ref, cnt_ref, cnt_sc, *, num_classes):
    # feat_ref: (C, tile) f32      lbl_ref: (1, tile) int32
    # emb_ref:  (C, NC) f32   per-image class means (output, VMEM-resident over j)
    # cnt_ref:  (1, NC) f32   per-image presence flags (output)
    # cnt_sc:   (1, NC) f32   per-image pixel-count scratch
    j = pl.program_id(1)
    n_tiles = pl.num_programs(1)
    tile = lbl_ref.shape[1]

    @pl.when(j == 0)
    def _():  # new image: reset the resident accumulators
        emb_ref[...] = jnp.zeros_like(emb_ref)
        cnt_sc[...] = jnp.zeros_like(cnt_sc)

    # Compact one-hot: (NC, tile) with the big `tile` dim on lanes (cheap VPU
    # compare/cast).  Label 255 and any out-of-range id match no class and the
    # zero-padded tail pixels land in class 0, which is excluded at fold time.
    lbl = lbl_ref[...]                                          # (1, tile) int32
    cls_ids = lax.broadcasted_iota(jnp.int32, (num_classes, tile), 0)
    onehot = (cls_ids == lbl).astype(jnp.bfloat16)              # (NC, tile)

    # f32 DMA'd feat, cast to bf16 on the VPU adjacent to the matmul.
    feat = feat_ref[...].astype(jnp.bfloat16)                   # (C, tile)

    # feat (C,T) . onehot (NC,T)^T -> (C, NC).  feat is the canonical LHS
    # (contracting its lane dim); only the small one-hot needs a relayout.
    emb_ref[...] += lax.dot_general(
        feat, onehot,
        dimension_numbers=(((1,), (1,)), ((), ())),
        preferred_element_type=jnp.float32)                     # (C, NC) f32

    # Exact per-class pixel count via the (idle) MXU: ones(1,T) . onehot^T.
    ones_row = jnp.ones((1, tile), dtype=jnp.bfloat16)
    cnt_sc[...] += lax.dot_general(
        ones_row, onehot,
        dimension_numbers=(((1,), (1,)), ((), ())),
        preferred_element_type=jnp.float32)                     # (1, NC) f32

    @pl.when(j == n_tiles - 1)
    def _():  # image finished: per-image class means + presence (class 0 excluded)
        counts = cnt_sc[...]                                    # (1, NC)
        col = lax.broadcasted_iota(jnp.int32, (1, num_classes), 1)
        not_bg = (col != 0).astype(jnp.float32)                 # class 0 / 255 / padding out
        # feat_tem.mean(2).mean(1) * H * W / (mask_tem.sum() + 1e-6)
        emb_ref[...] = emb_ref[...] / (counts + 1e-6) * not_bg
        cnt_ref[...] = (counts > 0).astype(jnp.float32) * not_bg


def _choose_hw_tile(hw, c, feat_bytes=4, budget_bytes=16 * 1024 * 1024):
    """Spatial tile T: double-buffered f32 feat + int32 label tiles fit the VMEM
    budget, T is a multiple of 128 lanes (<= 8192).  Prefer a divisor of HW so
    no padding is needed, but never drop below max(1024, t_max//2) lanes (tiny
    tiles fall off the HBM roofline plateau); otherwise the wrapper pads."""
    per_pos = 2 * (c * feat_bytes + 4)       # 2 buffers x (feat column + int32 label)
    t_max = max(128, min(8192, (budget_bytes // per_pos) // 128 * 128))
    if hw <= t_max:
        return hw                            # single full-width tile (exempt from 128-rule)
    floor = max(1024, t_max // 2)
    t = t_max
    while t >= floor:
        if hw % t == 0:
            return t
        t -= 128
    return t_max                             # padded-tail path in the wrapper (rare)


def frc_class_sums(feat, label, num_classes):
    B, C, H, W = feat.shape
    hw = H * W
    feat2 = feat.reshape(B, C, hw)                     # free metadata reshape, stays f32
    lbl2 = label.reshape(B, 1, hw).astype(jnp.int32)

    tile = _choose_hw_tile(hw, C)
    rem = hw % tile
    if rem != 0:
        # Rare path (non-dividing HW): zero-pad once.  Pad label = 0 -> class 0,
        # which is excluded by not_bg at fold time, so this is exact and keeps
        # the hot loop free of any tail masking / stale-VMEM hazards.
        pad = tile - rem
        feat2 = jnp.pad(feat2, ((0, 0), (0, 0), (0, pad)))
        lbl2 = jnp.pad(lbl2, ((0, 0), (0, 0), (0, pad)))
        hw_p = hw + pad
    else:
        hw_p = hw
    n_tiles = hw_p // tile

    kernel = functools.partial(_class_sum_kernel, num_classes=num_classes)

    emb_b, cnt_b = pl.pallas_call(
        kernel,
        out_shape=(jax.ShapeDtypeStruct((B, C, num_classes), jnp.float32),
                   jax.ShapeDtypeStruct((B, 1, num_classes), jnp.float32)),
        grid=(B, n_tiles),
        in_specs=[
            pl.BlockSpec((None, C, tile), lambda b, j: (b, 0, j)),
            pl.BlockSpec((None, 1, tile), lambda b, j: (b, 0, j)),
        ],
        out_specs=(
            pl.BlockSpec((None, C, num_classes), lambda b, j: (b, 0, 0)),
            pl.BlockSpec((None, 1, num_classes), lambda b, j: (b, 0, 0)),
        ),
        scratch_shapes=[
            pltpu.VMEM((1, num_classes), jnp.float32),
        ],
        compiler_params=pltpu.CompilerParams(
            dimension_semantics=("parallel", "arbitrary"),
            vmem_limit_bytes=32 * 1024 * 1024),
    )(feat2, lbl2)

    # Tiny batch reduction + 10xC transpose in the wrapper (negligible).
    emb_sum = emb_b.sum(axis=0).T                      # (NC, C)
    cnt = cnt_b.sum(axis=0).T                          # (NC, 1)
    return emb_sum, cnt


# ----------------------------------------------------------------------------
# Epilogue (plain JAX): K x K "cosine" matrix + cross-entropy vs arange(K),
# with the data-dependent class compaction done via masking (no host sync).
# ----------------------------------------------------------------------------
def _frc_loss_from_sums(emb_sum, cnt, loss_weight):
    present = cnt[:, 0] > 0                                 # (NC,) class-0 is never present
    # embeddings[i] = embedding_list[i] / num_list[i]  (absent rows stay zero)
    emb = emb_sum / jnp.where(cnt > 0, cnt, 1.0)            # (NC, C)

    g = emb @ emb.T                                         # (NC, NC) dot products
    sq = jnp.sum(emb * emb, axis=1, keepdims=True)          # (NC, 1) squared norms
    denom = sq @ sq.T                                       # outer product of squared norms
    pair = jnp.logical_and(present[:, None], present[None, :])
    # TODO(synk): mirrors the reference exactly — no epsilon on the squared-norm
    # product, so a present class with an exactly-zero embedding gives inf/nan.
    cos = g / jnp.where(pair, denom, 1.0)

    # F.cross_entropy over present classes only: mask absent columns before the
    # logsumexp, zero absent rows, divide by the number of present classes.
    logits = jnp.where(present[None, :], cos, -1e30)
    m = jnp.max(logits, axis=1, keepdims=True)
    lse = m[:, 0] + jnp.log(jnp.sum(jnp.exp(logits - m), axis=1))
    diag = jnp.diagonal(cos)
    per_row = jnp.where(present, lse - diag, 0.0)
    k = jnp.sum(present.astype(jnp.float32))
    loss = jnp.sum(per_row) / jnp.maximum(k, 1.0)           # (ref crashes if k==0; we return 0)
    return loss * loss_weight


@functools.partial(jax.jit, static_argnames=("num_classes", "loss_weight"))
def frc_loss(feat, label, num_classes=10, loss_weight=1.0):
    emb_sum, cnt = frc_class_sums(feat, label, num_classes)
    return _frc_loss_from_sums(emb_sum, cnt, loss_weight)


if __name__ == "__main__":
    key = jax.random.PRNGKey(0)
    kf, kl, ki = jax.random.split(key, 3)

    B, C, H, W = 2, 4, 16, 16
    NUM_CLASSES = 10

    feat = jax.random.normal(kf, (B, C, H, W), dtype=jnp.float32)
    label = jax.random.randint(kl, (B, 1, H, W), 0, NUM_CLASSES, dtype=jnp.int32)
    # sprinkle some ignore pixels (255) to exercise the label==255 path
    ignore_mask = jax.random.uniform(ki, (B, 1, H, W)) < 0.05
    label = jnp.where(ignore_mask, 255, label)

    loss = frc_loss(feat, label, num_classes=NUM_CLASSES, loss_weight=1.0)
    jax.block_until_ready(loss)
    print("KERNEL_OK")
</pallas_src>

<mosaic_0001>
module attributes {stable_mosaic.version = 11 : i64} {
  func.func @_class_sum_kernel(%arg0: i32, %arg1: i32, %arg2: memref<1x4x256xf32, #tpu.memory_space<vmem>>, %arg3: memref<1x1x256xi32, #tpu.memory_space<vmem>>, %arg4: memref<1x4x10xf32, #tpu.memory_space<vmem>>, %arg5: memref<1x1x10xf32, #tpu.memory_space<vmem>>, %arg6: memref<1x10xf32, #tpu.memory_space<vmem>>) attributes {dimension_semantics = [#tpu.dimension_semantics<parallel>, #tpu.dimension_semantics<arbitrary>], iteration_bounds = array<i64: 2, 1>, scalar_prefetch = 0 : i64, scratch_operands = 1 : i64, tpu.core_type = #tpu.core_type<tc>, window_params = [{transform_indices = @transform_0, window_bounds = array<i64: 1, 4, 256>}, {transform_indices = @transform_1, window_bounds = array<i64: 1, 1, 256>}, {transform_indices = @transform_2, window_bounds = array<i64: 1, 4, 10>}, {transform_indices = @transform_3, window_bounds = array<i64: 1, 1, 10>}]} {
    %c0_i32 = arith.constant 0 : i32
    %0 = arith.cmpi eq, %arg1, %c0_i32 : i32
    %1 = arith.extui %0 : i1 to i32
    %c0_i32_0 = arith.constant 0 : i32
    %2 = arith.cmpi ne, %1, %c0_i32_0 : i32
    scf.if %2 {
      %cst_20 = arith.constant 0.000000e+00 : f32
      %29 = vector.broadcast %cst_20 : f32 to vector<4x10xf32>
      %c0_21 = arith.constant 0 : index
      %c0_22 = arith.constant 0 : index
      %c0_23 = arith.constant 0 : index
      %30 = vector.load %arg4[%c0_21, %c0_22, %c0_23] : memref<1x4x10xf32, #tpu.memory_space<vmem>>, vector<1x4x10xf32>
      %31 = vector.shape_cast %30 : vector<1x4x10xf32> to vector<4x10xf32>
      %32 = vector.shape_cast %29 : vector<4x10xf32> to vector<1x4x10xf32>
      tpu.vector_store %arg4[%c0_21, %c0_22, %c0_23], %32 {strides = array<i32>} : memref<1x4x10xf32, #tpu.memory_space<vmem>>, vector<1x4x10xf32>,
      %cst_24 = arith.constant 0.000000e+00 : f32
      %33 = vector.broadcast %cst_24 : f32 to vector<1x10xf32>
      %c0_25 = arith.constant 0 : index
      %c0_26 = arith.constant 0 : index
      %34 = vector.load %arg6[%c0_25, %c0_26] : memref<1x10xf32, #tpu.memory_space<vmem>>, vector<1x10xf32>
      tpu.vector_store %arg6[%c0_25, %c0_26], %33 {strides = array<i32>} : memref<1x10xf32, #tpu.memory_space<vmem>>, vector<1x10xf32>,
    } else {
    }
    %c0 = arith.constant 0 : index
    %c0_1 = arith.constant 0 : index
    %c0_2 = arith.constant 0 : index
    %3 = vector.load %arg3[%c0, %c0_1, %c0_2] : memref<1x1x256xi32, #tpu.memory_space<vmem>>, vector<1x1x256xi32>
    %4 = vector.shape_cast %3 : vector<1x1x256xi32> to vector<1x256xi32>
    %5 = tpu.iota {dimensions = array<i32: 0>} : vector<10x256xi32>
    %6 = vector.broadcast %4 : vector<1x256xi32> to vector<10x256xi32>
    %7 = arith.cmpi eq, %5, %6 : vector<10x256xi32>
    %8 = arith.extui %7 : vector<10x256xi1> to vector<10x256xi32>
    %9 = arith.sitofp %8 : vector<10x256xi32> to vector<10x256xf32>
    %10 = arith.truncf %9 : vector<10x256xf32> to vector<10x256xbf16>
    %c0_3 = arith.constant 0 : index
    %c0_4 = arith.constant 0 : index
    %c0_5 = arith.constant 0 : index
    %11 = vector.load %arg2[%c0_3, %c0_4, %c0_5] : memref<1x4x256xf32, #tpu.memory_space<vmem>>, vector<1x4x256xf32>
    %12 = vector.shape_cast %11 : vector<1x4x256xf32> to vector<4x256xf32>
    %13 = arith.truncf %12 : vector<4x256xf32> to vector<4x256xbf16>
    %c0_6 = arith.constant 0 : index
    %c0_7 = arith.constant 0 : index
    %c0_8 = arith.constant 0 : index
    %14 = vector.load %arg4[%c0_6, %c0_7, %c0_8] : memref<1x4x10xf32, #tpu.memory_space<vmem>>, vector<1x4x10xf32>
    %15 = vector.shape_cast %14 : vector<1x4x10xf32> to vector<4x10xf32>
    %cst = arith.constant dense<0.000000e+00> : vector<4x10xf32>
    %16 = tpu.matmul %13, %10, %cst {dimension_numbers = #tpu.dot_dimension_numbers<[1], [1], [0], [0], [0, 0, 1, 0], [], []>} : vector<4x256xbf16>, vector<10x256xbf16>, vector<4x10xf32> -> vector<4x10xf32>
    %17 = arith.addf %15, %16 : vector<4x10xf32>
    %c0_9 = arith.constant 0 : index
    %c0_10 = arith.constant 0 : index
    %c0_11 = arith.constant 0 : index
    %18 = vector.load %arg4[%c0_9, %c0_10, %c0_11] : memref<1x4x10xf32, #tpu.memory_space<vmem>>, vector<1x4x10xf32>
    %19 = vector.shape_cast %18 : vector<1x4x10xf32> to vector<4x10xf32>
    %20 = vector.shape_cast %17 : vector<4x10xf32> to vector<1x4x10xf32>
    tpu.vector_store %arg4[%c0_9, %c0_10, %c0_11], %20 {strides = array<i32>} : memref<1x4x10xf32, #tpu.memory_space<vmem>>, vector<1x4x10xf32>,
    %cst_12 = arith.constant 1.000000e+00 : bf16
    %21 = vector.broadcast %cst_12 : bf16 to vector<1x256xbf16>
    %c0_13 = arith.constant 0 : index
    %c0_14 = arith.constant 0 : index
    %22 = vector.load %arg6[%c0_13, %c0_14] : memref<1x10xf32, #tpu.memory_space<vmem>>, vector<1x10xf32>
    %cst_15 = arith.constant dense<0.000000e+00> : vector<1x10xf32>
    %23 = tpu.matmul %21, %10, %cst_15 {dimension_numbers = #tpu.dot_dimension_numbers<[1], [1], [0], [0], [0, 0, 1, 0], [], []>} : vector<1x256xbf16>, vector<10x256xbf16>, vector<1x10xf32> -> vector<1x10xf32>
    %24 = arith.addf %22, %23 : vector<1x10xf32>
    %c0_16 = arith.constant 0 : index
    %c0_17 = arith.constant 0 : index
    %25 = vector.load %arg6[%c0_16, %c0_17] : memref<1x10xf32, #tpu.memory_space<vmem>>, vector<1x10xf32>
    tpu.vector_store %arg6[%c0_16, %c0_17], %24 {strides = array<i32>} : memref<1x10xf32, #tpu.memory_space<vmem>>, vector<1x10xf32>,
    %c0_i32_18 = arith.constant 0 : i32
    %26 = arith.cmpi eq, %arg1, %c0_i32_18 : i32
    %27 = arith.extui %26 : i1 to i32
    %c0_i32_19 = arith.constant 0 : i32
    %28 = arith.cmpi ne, %27, %c0_i32_19 : i32
    scf.if %28 {
      %c0_20 = arith.constant 0 : index
      %c0_21 = arith.constant 0 : index
      %29 = vector.load %arg6[%c0_20, %c0_21] : memref<1x10xf32, #tpu.memory_space<vmem>>, vector<1x10xf32>
      %30 = tpu.iota {dimensions = array<i32: 1>} : vector<1x10xi32>
      %c0_i32_22 = arith.constant 0 : i32
      %31 = vector.broadcast %c0_i32_22 : i32 to vector<1x10xi32>
      %32 = arith.cmpi ne, %30, %31 : vector<1x10xi32>
      %33 = arith.extui %32 : vector<1x10xi1> to vector<1x10xi32>
      %34 = arith.sitofp %33 : vector<1x10xi32> to vector<1x10xf32>
      %c0_23 = arith.constant 0 : index
      %c0_24 = arith.constant 0 : index
      %c0_25 = arith.constant 0 : index
      %35 = vector.load %arg4[%c0_23, %c0_24, %c0_25] : memref<1x4x10xf32, #tpu.memory_space<vmem>>, vector<1x4x10xf32>
      %36 = vector.shape_cast %35 : vector<1x4x10xf32> to vector<4x10xf32>
      %cst_26 = arith.constant 9.99999997E-7 : f32
      %37 = vector.broadcast %cst_26 : f32 to vector<1x10xf32>
      %38 = arith.addf %29, %37 : vector<1x10xf32>
      %39 = vector.broadcast %38 : vector<1x10xf32> to vector<4x10xf32>
      %40 = arith.divf %36, %39 : vector<4x10xf32>
      %41 = vector.broadcast %34 : vector<1x10xf32> to vector<4x10xf32>
      %42 = arith.mulf %40, %41 : vector<4x10xf32>
      %c0_27 = arith.constant 0 : index
      %c0_28 = arith.constant 0 : index
      %c0_29 = arith.constant 0 : index
      %43 = vector.load %arg4[%c0_27, %c0_28, %c0_29] : memref<1x4x10xf32, #tpu.memory_space<vmem>>, vector<1x4x10xf32>
      %44 = vector.shape_cast %43 : vector<1x4x10xf32> to vector<4x10xf32>
      %45 = vector.shape_cast %42 : vector<4x10xf32> to vector<1x4x10xf32>
      tpu.vector_store %arg4[%c0_27, %c0_28, %c0_29], %45 {strides = array<i32>} : memref<1x4x10xf32, #tpu.memory_space<vmem>>, vector<1x4x10xf32>,
      %cst_30 = arith.constant 0.000000e+00 : f32
      %46 = vector.broadcast %cst_30 : f32 to vector<1x10xf32>
      %47 = arith.cmpf ogt, %29, %46 : vector<1x10xf32>
      %48 = arith.extui %47 : vector<1x10xi1> to vector<1x10xi32>
      %49 = arith.sitofp %48 : vector<1x10xi32> to vector<1x10xf32>
      %50 = arith.mulf %49, %34 : vector<1x10xf32>
      %c0_31 = arith.constant 0 : index
      %c0_32 = arith.constant 0 : index
      %c0_33 = arith.constant 0 : index
      %51 = vector.load %arg5[%c0_31, %c0_32, %c0_33] : memref<1x1x10xf32, #tpu.memory_space<vmem>>, vector<1x1x10xf32>
      %52 = vector.shape_cast %51 : vector<1x1x10xf32> to vector<1x10xf32>
      %53 = vector.shape_cast %50 : vector<1x10xf32> to vector<1x1x10xf32>
      tpu.vector_store %arg5[%c0_31, %c0_32, %c0_33], %53 {strides = array<i32>} : memref<1x1x10xf32, #tpu.memory_space<vmem>>, vector<1x1x10xf32>,
    } else {
    }
    return
  }
  func.func @transform_0(%arg0: i32, %arg1: i32) -> (i32, i32, i32) {
    %c0_i32 = arith.constant 0 : i32
    %c0_i32_0 = arith.constant 0 : i32
    return %arg0, %c0_i32, %arg1 : i32, i32, i32
  }
  func.func @transform_1(%arg0: i32, %arg1: i32) -> (i32, i32, i32) {
    %c0_i32 = arith.constant 0 : i32
    %c0_i32_0 = arith.constant 0 : i32
    return %arg0, %c0_i32, %arg1 : i32, i32, i32
  }
  func.func @transform_2(%arg0: i32, %arg1: i32) -> (i32, i32, i32) {
    %c0_i32 = arith.constant 0 : i32
    %c0_i32_0 = arith.constant 0 : i32
    %c0_i32_1 = arith.constant 0 : i32
    return %arg0, %c0_i32, %c0_i32_0 : i32, i32, i32
  }
  func.func @transform_3(%arg0: i32, %arg1: i32) -> (i32, i32, i32) {
    %c0_i32 = arith.constant 0 : i32
    %c0_i32_0 = arith.constant 0 : i32
    %c0_i32_1 = arith.constant 0 : i32
    return %arg0, %c0_i32, %c0_i32_0 : i32, i32, i32
  }
}

</mosaic_0001>

<bundles_post_ra>
// kernel: frc_loss.1
= control target key start
LH: loop header
LB: loop body
LE: loop exit
PB: predicated region body
PF: predicated region fallthrough
CT: control target
= control target key end

     0   :  { %s583_s12 = smov 0   ;;  %s585_s13 = smov 0   ;;  %s641_s0 = inlined_call_operand.vmem [shape: f32[2,4,256], index: 0, kind: input, shape index: {}]   ;;  %s642_s1 = inlined_call_operand.vmem [shape: s32[2,1,256], index: 1, kind: input, shape index: {}]   ;;  %s643_s2 = inlined_call_operand.vmem [shape: f32[2,4,10], index: 2, kind: output, shape index: {0}]   ;;  %s644_s3 = inlined_call_operand.vmem [shape: f32[2,1,10], index: 3, kind: output, shape index: {1}]  }
   0x1   :  { %s587_s14 = smov 0  }
   0x2 LB: > { %s26_s15 = sadd.s32 1, %s554_s13  ;;  %p485_p0 = scmp.ge.s32.totalorder %s558_s14, 1  ;;  %s558_s14 = sphi %s587_s14, %s14_s14   ;;  %s554_s13 = sphi %s585_s13, %s646_s13   ;;  %s550_s12 = sphi %s583_s12, %s645_s12  }
   0x3   : > { %p28_p1 = scmp.ge.s32.totalorder %s26_s15, 2  ;;  %p175_p2 = scmp.lt.s32.totalorder %s558_s14, 3 }
   0x5   : > { %s648_s15 = smov (%p28_p1, %s26_s15), 0  ;;  %p176_p3 = pnand %p485_p0, %p175_p2 }
   0x6   : > { %p214_p4 = scmp.lt.s32.totalorder (!%p176_p3), %s550_s12, 1 }
   0x7   : > { %179 = sbr.rel (%p176_p3) target bundleno = 198 (0xc6), region = 28 }
   0xc   : > { %v250_v0 = vlaneseq  ;;  %s650_s12 = smov (!%p214_p4, %s550_s12), 1  ;;  %v560_v7 = vmov 1.0|1.0   ;;  %v561_v12 = vmov 1065369472   ;;  %vm247_vm6 = vcmask 73728  }
   0xd   : > { %s506_s16 = sshll.u32 %s650_s12, 3  ;;  %s488_s17 = sshll.u32 %s650_s12, 1  ;;  %v562_v13 = vmov 0.0   ;;  %vm245_vm7 = vcmask 76800  }
   0xe   : > { %v251_v1 = vshrl.u32 %v250_v0, 7  ;;  %s221_s20 = scalar_lea.vmem %s641_s0, %s506_s16  ;;  %s230_s23 = scalar_lea.vmem %s642_s1, %s488_s17  ;;  %248 = vst.msk [vmem:[#allocation2] sm:$0x1] %vm247_vm6, %v562_v13  ;;  %v343_v26 = vand.u32 127, %v250_v0 }
   0xf   : > { %v249_v3 = vld [vmem:[%s230_s23] sm:$0x3]  ;;  %s489_s24 = sshll.u32 %s650_s12, 2  ;;  %s238_s30 = scalar_lea.vmem %s644_s3, %s650_s12 }
  0x10   : > { %v252_v2 = vadd.s32 8, %v251_v1  ;;  %v269_v4 = vld [vmem:[%s221_s20] sm:$0xff]  ;;  %v253_v5 = vperm.slane %v249_v3, 0  ;;  %v254_v6 = vperm.slane %v249_v3, 1  ;;  %s616_s27 = scalar_lea.vmem %s643_s2, %s489_s24  ;;  %vm344_vm8 = vcmp.ne.s32.totalorder %v343_v26, 0 }
  0x11   : > { %271 = vst [vmem:[#allocation1] ss:$2 sm:$0xff] %v269_v4  ;;  %v502_v29 = vsel %vm344_vm8, 1.0, %v562_v13 }
  0x12   : > { %vm255_vm0 = vcmp.eq.s32.totalorder %v251_v1, %v253_v5  ;;  %vm257_vm1 = vcmp.eq.s32.totalorder %v252_v2, %v253_v5  ;;  %vm256_vm2 = vcmp.eq.s32.totalorder %v251_v1, %v254_v6  ;;  %vm258_vm3 = vcmp.eq.s32.totalorder %v252_v2, %v254_v6  ;;  %246 = vst.msk [vmem:[%s616_s27] sm:$0xf] %vm245_vm7, %v562_v13 }
  0x13   : > { %vm494_vm4 = vmpackc.low %vm257_vm1, %vm255_vm0 }
  0x14   : > { %499 = vmatpush.bf16.xpose.msk.msra.mxu2 %vm494_vm4, %v560_v7  ;;  %vm496_vm5 = vmpackc.low %vm258_vm3, %vm256_vm2  ;;  %495 = vmatpush.bf16.xpose.msk.msra.mxu0 %vm494_vm4, %v560_v7 }
  0x15   : > { %501 = vmatpush.bf16.xpose.msk.msra.mxu3 %vm496_vm5, %v560_v7  ;;  %497 = vmatpush.bf16.xpose.msk.msra.mxu1 %vm496_vm5, %v560_v7  ;;  %v308_v20 = vld [vmem:[#allocation2] sm:$0x1] }
  0x18   : > { %v272_v8 = vld.sshfl [vmem:[#allocation1] sm:$0xff pattern:$0x75316420]  ;;  %v273_v9 = vld.sshfl [vmem:[#allocation1 + $0x8] sm:$0xff pattern:$0x75316420] }
  0x19   : > { %v276_v10 = vpack.c.bf16 %v272_v8, %v272_v8  ;;  %v277_v11 = vpack.c.bf16 %v273_v9, %v273_v9  ;;  %v278_v15 = vld [vmem:[%s616_s27] sm:$0xf] }
  0x1b   : > { %317 = vmatmul.bf16.vlgmr.msra.gmra.mxu2 %v561_v12  ;;  %287 = vmatmul.bf16.vlgmr.msra.gmra.mxu0 %v276_v10 }
  0x1c   : > { %330 = vmatmul.bf16.vlgmr.msra.gmra.mxu3 %v561_v12  ;;  %300 = vmatmul.bf16.vlgmr.msra.gmra.mxu1 %v277_v11 }
  0x98   : > { %v288_v14 = vpop.f32.mrf.mxu0 }
  0x99   : > { %v301_v16 = vpop.f32.mrf.mxu1 }
  0x9a   : > { %v302_v17 = vadd.f32 %v301_v16, %v288_v14 }
  0x9c   : > { %v305_v18 = vadd.f32 %v302_v17, %v278_v15 }
  0x9e   : > { %v318_v19 = vpop.f32.mrf.mxu2  ;;  %307 = vst.msk [vmem:[%s616_s27] sm:$0xf] %vm245_vm7, %v305_v18 }
  0x9f   : > { %v331_v21 = vpop.f32.mrf.mxu3 }
  0xa0   : > { %v332_v22 = vadd.f32 %v331_v21, %v318_v19  ;;  %v290_v23 = vpop.f32.mrf.mxu0 }
  0xa1   : > { %v303_v24 = vpop.f32.mrf.mxu1 }
  0xa2   : > { %v335_v25 = vadd.f32 %v332_v22, %v308_v20 }
  0xa4   : > { %337 = vst.msk [vmem:[#allocation2] sm:$0x1] %vm247_vm6, %v335_v25 }
  0xa5   : > { %v347_v42 = vld [vmem:[%s616_s27] sm:$0xf] }
  0xa6   : > { %v320_v27 = vpop.f32.mrf.mxu2 }
  0xa7   : > { %v333_v28 = vpop.f32.mrf.mxu3 }
  0xab   : > { %v341_v30 = vld [vmem:[#allocation2] sm:$0x1] }
  0xac   : > { %v348_v31 = vadd.f32 1e-06, %v341_v30  ;;  %vm369_vm9 = vcmp.gt.f32.partialorder %v341_v30, 0.0 }
  0xad   : > { %v503_v32 = vsel %vm369_vm9, 1.0, %v562_v13 }
  0xae   : > { %v350_v33 = vperm.slane %v348_v31, 0  ;;  %v372_v34 = vmul.f32 %v503_v32, %v502_v29 }
  0xb0   : > { %534 = vrcp.f32 %v350_v33  ;;  %373 = vst.msk [vmem:[%s238_s30] sm:$0x1] %vm247_vm6, %v372_v34  ;;  %v363_v38 = vand.u32 2147483648, %v350_v33  ;;  %v361_v40 = vand.u32 2147483647, %v350_v33  ;;  %vm357_vm11 = vweird.f32 %v350_v33 }
  0xb2   : > { %v364_v43 = vor.u32 1.1754944e-38, %v363_v38  ;;  %vm362_vm13 = vcmp.eq.f32.partialorder %v361_v40, 8.507059e+37 }
  0xb6   : > { %v535_v35 = vpop.eup %534 }
  0xb7   : > { %v353_v36 = vmul.f32 %v535_v35, %v350_v33  ;;  %vm358_vm10 = vweird.f32 %v535_v35 }
  0xb8   : > { %vm359_vm12 = vmor %vm357_vm11, %vm358_vm10 }
  0xb9   : > { %v354_v37 = vsub.f32 1.0, %v353_v36 }
  0xbb   : > { %v355_v39 = vmul.f32 %v535_v35, %v354_v37 }
  0xbd   : > { %v356_v41 = vadd.f32 %v535_v35, %v355_v39 }
  0xbf   : > { %v360_v44 = vsel %vm359_vm12, %v535_v35, %v356_v41 }
  0xc0   : > { %v365_v45 = vsel %vm362_vm13, %v364_v43, %v360_v44 }
  0xc1   : > { %v366_v46 = vmul.f32 %v365_v45, %v347_v42 }
  0xc3   : > { %v367_v47 = vmul.f32 %v502_v29, %v366_v46 }
  0xc5   : > { %368 = vst.msk [vmem:[%s616_s27] sm:$0xf] %vm245_vm7, %v367_v47 }
  0xc6 PF: > { %s14_s14 = sadd.s32 1, %s558_s14   ;;  %s645_s12 = smov %s554_s13 }
  0xc7   : > { %p11_p5 = scmp.ge.s32.totalorder %s14_s14, 4   ;;  %s646_s13 = smov %s648_s15 }
  0xc9   :  { %13 = sbr.rel (!%p11_p5) target bundleno = 2 (0x2), region = 81 }

</bundles_post_ra>
